<compile_context>
chip_gen: v7x
topology: tpu7x:2x2x1
jax: 0.10.0
libtpu: 0.0.40
codegen_flags: <defaults>
</compile_context>

<pallas_src>
from functools import partial

import numpy as np

import jax
import jax.numpy as jnp
from jax.experimental import pallas as pl
from jax.experimental.pallas import tpu as pltpu


def _downsample_kernel(x_ref, w_ref, m_ref, o_ref, col_ref, *,
                       Nb, H, W, Cin, Cout, negative_slope, eps):
    """One grid step: Nb samples, full spatial extent.

    x_ref  : (Nb, Cin, H*W)    input block (channel-major, spatial flattened)
    w_ref  : (Cout, 9*Cin)     conv weights, k index = (dy*3 + dx)*Cin + ci
    m_ref  : (2, H*W)          column masks: row 0 = "has left neighbour",
                               row 1 = "has right neighbour" (1.0 / 0.0)
    o_ref  : (Nb, Cout, H*W)   output block
    col_ref: (9*Cin, Nb*H*W)   im2col scratch (VMEM)
    """
    HW = H * W

    # Lanes not written by the shifted copies below correspond to the conv's
    # zero padding, so clear the scratch first (a few KiB of plain vst).
    col_ref[...] = jnp.zeros_like(col_ref)

    # im2col:  col[(dy*3+dx)*Cin + ci, nb*HW + h*W + w]
    #            = x[nb, ci, (h+dy-1)*W + (w+dx-1)]  if in bounds else 0
    for nb in range(Nb):
        xs = x_ref[nb]                                   # (Cin, HW)
        base = nb * HW
        for dy in range(3):
            for dx in range(3):
                t = dy * 3 + dx
                s = (dy - 1) * W + (dx - 1)              # flat source shift
                # Output-lane range whose source row exists and whose shifted
                # source index stays inside [0, HW).
                lo = max(max(0, 1 - dy) * W, -s)
                hi = min(min(H, H + 1 - dy) * W, HW - s)
                if hi <= lo:
                    continue
                seg = xs[:, lo + s:hi + s]               # (Cin, hi - lo)
                if dx == 0:                              # needs w-1 >= 0
                    seg = seg * m_ref[0:1, lo:hi]
                elif dx == 2:                            # needs w+1 <= W-1
                    seg = seg * m_ref[1:2, lo:hi]
                col_ref[t * Cin:(t + 1) * Cin,
                        base + lo:base + hi] = seg.astype(col_ref.dtype)

    # Single fused MXU matmul for all 9 taps and all Nb samples.
    acc = jnp.dot(w_ref[...], col_ref[...],
                  preferred_element_type=jnp.float32)    # (Cout, Nb*HW)

    # InstanceNorm2d (no affine, biased variance) + LeakyReLU, per sample.
    inv_hw = 1.0 / HW
    for nb in range(Nb):
        y = acc[:, nb * HW:(nb + 1) * HW]                # (Cout, HW) lane-dense
        mean = jnp.sum(y, axis=1, keepdims=True) * inv_hw
        var = jnp.sum(jnp.square(y - mean), axis=1, keepdims=True) * inv_hw
        z = (y - mean) * jax.lax.rsqrt(var + eps)
        z = jnp.where(z >= 0, z, negative_slope * z)
        o_ref[nb] = z.astype(o_ref.dtype)


def _pick_batch_block(n, max_block=8):
    """Samples per grid step: batch a few samples to widen the matmul, but keep
    at least 2 grid blocks when possible so megacore / multi-TensorCore parts
    have parallel work and input/output DMAs have something to pipeline."""
    cands = [d for d in range(1, min(n, max_block) + 1)
             if n % d == 0 and n // d >= 2]
    return max(cands) if cands else 1


def downsample_forward(x_nchw, weight_oihw, *, negative_slope=0.2, eps=1e-5,
                       batch_block=None, matmul_dtype=None):
    """x_nchw: (N, Cin, H, W); weight_oihw: (Cout, Cin, 3, 3). Returns NCHW."""
    N, Cin, H, W = x_nchw.shape
    Cout, Cin_w, KH, KW = weight_oihw.shape
    assert (Cin_w, KH, KW) == (Cin, 3, 3)
    HW = H * W

    Nb = _pick_batch_block(N) if batch_block is None else batch_block
    assert N % Nb == 0

    # bf16 matmul inputs (f32 accumulation) are worthwhile on v6e/v7x when the
    # accuracy budget allows; default keeps full f32 to match the reference.
    mm_dtype = np.dtype(np.float32) if matmul_dtype is None \
        else np.dtype(matmul_dtype)

    # NCHW -> (N, Cin, H*W): contiguous, free reshape (no extra HBM pass).
    x_flat = jnp.reshape(x_nchw, (N, Cin, HW))
    # (Cout, Cin, 3, 3) -> (Cout, 9*Cin) with k = (dy*3+dx)*Cin + ci (tiny).
    w2 = jnp.transpose(weight_oihw, (0, 2, 3, 1)).reshape(Cout, 9 * Cin)
    w2 = w2.astype(mm_dtype)

    # Compile-time column masks: does column w have a left / right neighbour?
    wcol = np.arange(HW, dtype=np.int64) % W
    masks = jnp.asarray(
        np.stack([wcol >= 1, wcol <= W - 2]).astype(np.float32))   # (2, HW)

    kernel = partial(_downsample_kernel, Nb=Nb, H=H, W=W, Cin=Cin, Cout=Cout,
                     negative_slope=negative_slope, eps=eps)

    flops = 2 * N * HW * Cout * 9 * Cin + 8 * N * Cout * HW
    bytes_accessed = (N * Cin * HW * x_nchw.dtype.itemsize
                      + Cout * 9 * Cin * mm_dtype.itemsize
                      + N * Cout * HW * x_nchw.dtype.itemsize)

    out_flat = pl.pallas_call(
        kernel,
        out_shape=jax.ShapeDtypeStruct((N, Cout, HW), x_nchw.dtype),
        grid_spec=pltpu.PrefetchScalarGridSpec(
            num_scalar_prefetch=0,
            grid=(N // Nb,),
            in_specs=[
                pl.BlockSpec((Nb, Cin, HW), lambda n: (n, 0, 0)),
                pl.BlockSpec((Cout, 9 * Cin), lambda n: (0, 0)),
                pl.BlockSpec((2, HW), lambda n: (0, 0)),
            ],
            out_specs=pl.BlockSpec((Nb, Cout, HW), lambda n: (n, 0, 0)),
            scratch_shapes=[pltpu.VMEM((9 * Cin, Nb * HW), mm_dtype)],
        ),
        compiler_params=pltpu.CompilerParams(
            dimension_semantics=("parallel",)),
        cost_estimate=pl.CostEstimate(flops=flops, transcendentals=N * Cout,
                                      bytes_accessed=bytes_accessed),
    )(x_flat, w2, masks)

    return jnp.reshape(out_flat, (N, Cout, H, W))


def _reference(x_nchw, weight_oihw, *, negative_slope=0.2, eps=1e-5):
    """Pure-JAX reference matching PyTorch semantics (for verification)."""
    y = jax.lax.conv_general_dilated(
        x_nchw.astype(jnp.float32), weight_oihw.astype(jnp.float32),
        window_strides=(1, 1), padding=((1, 1), (1, 1)),
        dimension_numbers=("NCHW", "OIHW", "NCHW"))
    mean = jnp.mean(y, axis=(2, 3), keepdims=True)
    var = jnp.mean((y - mean) ** 2, axis=(2, 3), keepdims=True)
    y = (y - mean) * jax.lax.rsqrt(var + eps)
    return jnp.where(y >= 0, y, negative_slope * y)


if __name__ == "__main__":
    # Small shapes consistent with the module's forward.
    N, in_ch, out_ch, H, W = 2, 4, 8, 16, 16

    key = jax.random.PRNGKey(0)
    kx, kw = jax.random.split(key)
    x = jax.random.normal(kx, (N, in_ch, H, W), dtype=jnp.float32)
    # Deterministic Kaiming-style init for Conv2d weights (OIHW), no bias.
    fan_in = in_ch * 3 * 3
    weight = jax.random.normal(kw, (out_ch, in_ch, 3, 3),
                               dtype=jnp.float32) * (2.0 / fan_in) ** 0.5

    ref = jax.block_until_ready(_reference(x, weight))

    out = jax.block_until_ready(downsample_forward(x, weight))
    assert out.shape == (N, out_ch, H, W)
    assert jnp.allclose(out, ref, rtol=1e-4, atol=1e-4), \
        float(jnp.max(jnp.abs(out - ref)))

    # Also exercise the multi-sample-per-grid-step path.
    out_b = jax.block_until_ready(downsample_forward(x, weight, batch_block=2))
    assert jnp.allclose(out_b, ref, rtol=1e-4, atol=1e-4), \
        float(jnp.max(jnp.abs(out_b - ref)))

    print("KERNEL_OK")
</pallas_src>

<mosaic_0001>
module attributes {stable_mosaic.version = 11 : i64} {
  func.func @_downsample_kernel(%arg0: i32, %arg1: memref<1x4x256xf32, #tpu.memory_space<vmem>>, %arg2: memref<8x36xf32, #tpu.memory_space<vmem>>, %arg3: memref<2x256xf32, #tpu.memory_space<vmem>>, %arg4: memref<1x8x256xf32, #tpu.memory_space<vmem>>, %arg5: memref<36x256xf32, #tpu.memory_space<vmem>>) attributes {dimension_semantics = [#tpu.dimension_semantics<parallel>], iteration_bounds = array<i64: 2>, scalar_prefetch = 0 : i64, scratch_operands = 1 : i64, tpu.core_type = #tpu.core_type<tc>, window_params = [{transform_indices = @transform_0, window_bounds = array<i64: 1, 4, 256>}, {pipeline_mode = #tpu.pipeline_mode<synchronous>, transform_indices = @transform_1, window_bounds = array<i64: 8, 36>}, {pipeline_mode = #tpu.pipeline_mode<synchronous>, transform_indices = @transform_2, window_bounds = array<i64: 2, 256>}, {transform_indices = @transform_3, window_bounds = array<i64: 1, 8, 256>}]} {
    %cst = arith.constant 0.000000e+00 : f32
    %0 = vector.broadcast %cst : f32 to vector<36x256xf32>
    %c0 = arith.constant 0 : index
    %c0_0 = arith.constant 0 : index
    %1 = vector.load %arg5[%c0, %c0_0] : memref<36x256xf32, #tpu.memory_space<vmem>>, vector<36x256xf32>
    tpu.vector_store %arg5[%c0, %c0_0], %0 {strides = array<i32>} : memref<36x256xf32, #tpu.memory_space<vmem>>, vector<36x256xf32>,
    %c0_1 = arith.constant 0 : index
    %c0_2 = arith.constant 0 : index
    %c0_3 = arith.constant 0 : index
    %2 = vector.load %arg1[%c0_1, %c0_2, %c0_3] : memref<1x4x256xf32, #tpu.memory_space<vmem>>, vector<1x4x256xf32>
    %3 = vector.shape_cast %2 : vector<1x4x256xf32> to vector<4x256xf32>
    %4 = vector.extract_strided_slice %3 {offsets = [0, 0], sizes = [4, 239], strides = [1, 1]} : vector<4x256xf32> to vector<4x239xf32>
    %c0_4 = arith.constant 0 : index
    %c17 = arith.constant 17 : index
    %5 = vector.load %arg3[%c0_4, %c17] : memref<2x256xf32, #tpu.memory_space<vmem>>, vector<1x239xf32>
    %6 = vector.broadcast %5 : vector<1x239xf32> to vector<4x239xf32>
    %7 = arith.mulf %4, %6 : vector<4x239xf32>
    %c0_5 = arith.constant 0 : index
    %c17_6 = arith.constant 17 : index
    %8 = vector.load %arg5[%c0_5, %c17_6] : memref<36x256xf32, #tpu.memory_space<vmem>>, vector<4x239xf32>
    tpu.vector_store %arg5[%c0_5, %c17_6], %7 {strides = array<i32>} : memref<36x256xf32, #tpu.memory_space<vmem>>, vector<4x239xf32>,
    %9 = vector.extract_strided_slice %3 {offsets = [0, 0], sizes = [4, 240], strides = [1, 1]} : vector<4x256xf32> to vector<4x240xf32>
    %c4 = arith.constant 4 : index
    %c16 = arith.constant 16 : index
    %10 = vector.load %arg5[%c4, %c16] : memref<36x256xf32, #tpu.memory_space<vmem>>, vector<4x240xf32>
    tpu.vector_store %arg5[%c4, %c16], %9 {strides = array<i32>} : memref<36x256xf32, #tpu.memory_space<vmem>>, vector<4x240xf32>,
    %11 = vector.extract_strided_slice %3 {offsets = [0, 1], sizes = [4, 240], strides = [1, 1]} : vector<4x256xf32> to vector<4x240xf32>
    %c1 = arith.constant 1 : index
    %c16_7 = arith.constant 16 : index
    %12 = vector.load %arg3[%c1, %c16_7] : memref<2x256xf32, #tpu.memory_space<vmem>>, vector<1x240xf32>
    %13 = vector.broadcast %12 : vector<1x240xf32> to vector<4x240xf32>
    %14 = arith.mulf %11, %13 : vector<4x240xf32>
    %c8 = arith.constant 8 : index
    %c16_8 = arith.constant 16 : index
    %15 = vector.load %arg5[%c8, %c16_8] : memref<36x256xf32, #tpu.memory_space<vmem>>, vector<4x240xf32>
    tpu.vector_store %arg5[%c8, %c16_8], %14 {strides = array<i32>} : memref<36x256xf32, #tpu.memory_space<vmem>>, vector<4x240xf32>,
    %16 = vector.extract_strided_slice %3 {offsets = [0, 0], sizes = [4, 255], strides = [1, 1]} : vector<4x256xf32> to vector<4x255xf32>
    %c0_9 = arith.constant 0 : index
    %c1_10 = arith.constant 1 : index
    %17 = vector.load %arg3[%c0_9, %c1_10] : memref<2x256xf32, #tpu.memory_space<vmem>>, vector<1x255xf32>
    %18 = vector.broadcast %17 : vector<1x255xf32> to vector<4x255xf32>
    %19 = arith.mulf %16, %18 : vector<4x255xf32>
    %c12 = arith.constant 12 : index
    %c1_11 = arith.constant 1 : index
    %20 = vector.load %arg5[%c12, %c1_11] : memref<36x256xf32, #tpu.memory_space<vmem>>, vector<4x255xf32>
    tpu.vector_store %arg5[%c12, %c1_11], %19 {strides = array<i32>} : memref<36x256xf32, #tpu.memory_space<vmem>>, vector<4x255xf32>,
    %c16_12 = arith.constant 16 : index
    %c0_13 = arith.constant 0 : index
    %21 = vector.load %arg5[%c16_12, %c0_13] : memref<36x256xf32, #tpu.memory_space<vmem>>, vector<4x256xf32>
    tpu.vector_store %arg5[%c16_12, %c0_13], %3 {strides = array<i32>} : memref<36x256xf32, #tpu.memory_space<vmem>>, vector<4x256xf32>,
    %22 = vector.extract_strided_slice %3 {offsets = [0, 1], sizes = [4, 255], strides = [1, 1]} : vector<4x256xf32> to vector<4x255xf32>
    %c1_14 = arith.constant 1 : index
    %c0_15 = arith.constant 0 : index
    %23 = vector.load %arg3[%c1_14, %c0_15] : memref<2x256xf32, #tpu.memory_space<vmem>>, vector<1x255xf32>
    %24 = vector.broadcast %23 : vector<1x255xf32> to vector<4x255xf32>
    %25 = arith.mulf %22, %24 : vector<4x255xf32>
    %c20 = arith.constant 20 : index
    %c0_16 = arith.constant 0 : index
    %26 = vector.load %arg5[%c20, %c0_16] : memref<36x256xf32, #tpu.memory_space<vmem>>, vector<4x255xf32>
    tpu.vector_store %arg5[%c20, %c0_16], %25 {strides = array<i32>} : memref<36x256xf32, #tpu.memory_space<vmem>>, vector<4x255xf32>,
    %27 = vector.extract_strided_slice %3 {offsets = [0, 15], sizes = [4, 240], strides = [1, 1]} : vector<4x256xf32> to vector<4x240xf32>
    %c0_17 = arith.constant 0 : index
    %c0_18 = arith.constant 0 : index
    %28 = vector.load %arg3[%c0_17, %c0_18] : memref<2x256xf32, #tpu.memory_space<vmem>>, vector<1x240xf32>
    %29 = vector.broadcast %28 : vector<1x240xf32> to vector<4x240xf32>
    %30 = arith.mulf %27, %29 : vector<4x240xf32>
    %c24 = arith.constant 24 : index
    %c0_19 = arith.constant 0 : index
    %31 = vector.load %arg5[%c24, %c0_19] : memref<36x256xf32, #tpu.memory_space<vmem>>, vector<4x240xf32>
    tpu.vector_store %arg5[%c24, %c0_19], %30 {strides = array<i32>} : memref<36x256xf32, #tpu.memory_space<vmem>>, vector<4x240xf32>,
    %32 = vector.extract_strided_slice %3 {offsets = [0, 16], sizes = [4, 240], strides = [1, 1]} : vector<4x256xf32> to vector<4x240xf32>
    %c28 = arith.constant 28 : index
    %c0_20 = arith.constant 0 : index
    %33 = vector.load %arg5[%c28, %c0_20] : memref<36x256xf32, #tpu.memory_space<vmem>>, vector<4x240xf32>
    tpu.vector_store %arg5[%c28, %c0_20], %32 {strides = array<i32>} : memref<36x256xf32, #tpu.memory_space<vmem>>, vector<4x240xf32>,
    %34 = vector.extract_strided_slice %3 {offsets = [0, 17], sizes = [4, 239], strides = [1, 1]} : vector<4x256xf32> to vector<4x239xf32>
    %c1_21 = arith.constant 1 : index
    %c0_22 = arith.constant 0 : index
    %35 = vector.load %arg3[%c1_21, %c0_22] : memref<2x256xf32, #tpu.memory_space<vmem>>, vector<1x239xf32>
    %36 = vector.broadcast %35 : vector<1x239xf32> to vector<4x239xf32>
    %37 = arith.mulf %34, %36 : vector<4x239xf32>
    %c32 = arith.constant 32 : index
    %c0_23 = arith.constant 0 : index
    %38 = vector.load %arg5[%c32, %c0_23] : memref<36x256xf32, #tpu.memory_space<vmem>>, vector<4x239xf32>
    tpu.vector_store %arg5[%c32, %c0_23], %37 {strides = array<i32>} : memref<36x256xf32, #tpu.memory_space<vmem>>, vector<4x239xf32>,
    %c0_24 = arith.constant 0 : index
    %c0_25 = arith.constant 0 : index
    %39 = vector.load %arg2[%c0_24, %c0_25] : memref<8x36xf32, #tpu.memory_space<vmem>>, vector<8x36xf32>
    %c0_26 = arith.constant 0 : index
    %c0_27 = arith.constant 0 : index
    %40 = vector.load %arg5[%c0_26, %c0_27] : memref<36x256xf32, #tpu.memory_space<vmem>>, vector<36x256xf32>
    %cst_28 = arith.constant dense<0.000000e+00> : vector<8x256xf32>
    %41 = tpu.matmul %39, %40, %cst_28 {dimension_numbers = #tpu.dot_dimension_numbers<[1], [0], [0], [1], [0, 0, 1, 1], [], []>} : vector<8x36xf32>, vector<36x256xf32>, vector<8x256xf32> -> vector<8x256xf32>
    %cst_29 = arith.constant dense<0.000000e+00> : vector<8xf32>
    %42 = vector.multi_reduction <add>, %41, %cst_29 [1] : vector<8x256xf32> to vector<8xf32>
    %43 = vector.shape_cast %42 : vector<8xf32> to vector<8x1xf32>
    %cst_30 = arith.constant 3.906250e-03 : f32
    %44 = vector.broadcast %cst_30 : f32 to vector<8x1xf32>
    %45 = arith.mulf %43, %44 : vector<8x1xf32>
    %46 = vector.broadcast %45 : vector<8x1xf32> to vector<8x256xf32>
    %47 = arith.subf %41, %46 : vector<8x256xf32>
    %48 = arith.mulf %47, %47 : vector<8x256xf32>
    %cst_31 = arith.constant dense<0.000000e+00> : vector<8xf32>
    %49 = vector.multi_reduction <add>, %48, %cst_31 [1] : vector<8x256xf32> to vector<8xf32>
    %50 = vector.shape_cast %49 : vector<8xf32> to vector<8x1xf32>
    %cst_32 = arith.constant 3.906250e-03 : f32
    %51 = vector.broadcast %cst_32 : f32 to vector<8x1xf32>
    %52 = arith.mulf %50, %51 : vector<8x1xf32>
    %53 = vector.broadcast %45 : vector<8x1xf32> to vector<8x256xf32>
    %54 = arith.subf %41, %53 : vector<8x256xf32>
    %cst_33 = arith.constant 9.99999974E-6 : f32
    %55 = vector.broadcast %cst_33 : f32 to vector<8x1xf32>
    %56 = arith.addf %52, %55 : vector<8x1xf32>
    %57 = math.rsqrt %56 : vector<8x1xf32>
    %58 = vector.broadcast %57 : vector<8x1xf32> to vector<8x256xf32>
    %59 = arith.mulf %54, %58 : vector<8x256xf32>
    %cst_34 = arith.constant 0.000000e+00 : f32
    %60 = vector.broadcast %cst_34 : f32 to vector<8x256xf32>
    %61 = arith.cmpf oge, %59, %60 : vector<8x256xf32>
    %cst_35 = arith.constant 2.000000e-01 : f32
    %62 = vector.broadcast %cst_35 : f32 to vector<8x256xf32>
    %63 = arith.mulf %62, %59 : vector<8x256xf32>
    %64 = arith.select %61, %59, %63 : vector<8x256xi1>, vector<8x256xf32>
    %c0_36 = arith.constant 0 : index
    %c0_37 = arith.constant 0 : index
    %c0_38 = arith.constant 0 : index
    %65 = vector.load %arg4[%c0_36, %c0_37, %c0_38] : memref<1x8x256xf32, #tpu.memory_space<vmem>>, vector<1x8x256xf32>
    %66 = vector.shape_cast %65 : vector<1x8x256xf32> to vector<8x256xf32>
    %67 = vector.shape_cast %64 : vector<8x256xf32> to vector<1x8x256xf32>
    tpu.vector_store %arg4[%c0_36, %c0_37, %c0_38], %67 {strides = array<i32>} : memref<1x8x256xf32, #tpu.memory_space<vmem>>, vector<1x8x256xf32>,
    return
  }
  func.func @transform_0(%arg0: i32) -> (i32, i32, i32) {
    %c0_i32 = arith.constant 0 : i32
    %c0_i32_0 = arith.constant 0 : i32
    %c0_i32_1 = arith.constant 0 : i32
    return %arg0, %c0_i32, %c0_i32_0 : i32, i32, i32
  }
  func.func @transform_1(%arg0: i32) -> (i32, i32) {
    %c0_i32 = arith.constant 0 : i32
    %c0_i32_0 = arith.constant 0 : i32
    %c0_i32_1 = arith.constant 0 : i32
    return %c0_i32, %c0_i32_0 : i32, i32
  }
  func.func @transform_2(%arg0: i32) -> (i32, i32) {
    %c0_i32 = arith.constant 0 : i32
    %c0_i32_0 = arith.constant 0 : i32
    %c0_i32_1 = arith.constant 0 : i32
    return %c0_i32, %c0_i32_0 : i32, i32
  }
  func.func @transform_3(%arg0: i32) -> (i32, i32, i32) {
    %c0_i32 = arith.constant 0 : i32
    %c0_i32_0 = arith.constant 0 : i32
    %c0_i32_1 = arith.constant 0 : i32
    return %arg0, %c0_i32, %c0_i32_0 : i32, i32, i32
  }
}

</mosaic_0001>

<bundles_post_ra>
// kernel: tpu_custom_call.1
= control target key start
LH: loop header
LB: loop body
LE: loop exit
PB: predicated region body
PF: predicated region fallthrough
CT: control target
= control target key end

     0   :  { %8 = vsyncpa [#allocation4], 0  ;;  %s1167_s0 = inlined_call_operand.hbm [shape: f32[2,4,256], index: 0, kind: input, shape index: {}]   ;;  %s1168_s1 = inlined_call_operand.hbm [shape: f32[8,36], index: 1, kind: input, shape index: {}]   ;;  %s1169_s2 = inlined_call_operand.vmem [shape: f32[2,256], index: 2, kind: input, shape index: {}]   ;;  %s1170_s3 = inlined_call_operand.hbm [shape: f32[2,8,256], index: 3, kind: output, shape index: {}]  }
   0x1   :  { %10 = vsyncpa [#allocation4 + $0x1], 0 }
   0x2   :  { %11 = vsyncpa [#allocation7], 0 }
   0x3   :  { %12 = vsyncpa [#allocation5], 0 }
   0x4   :  { %14 = vsyncpa [#allocation5 + $0x1], 0  ;;  %s895_s12 = smov 0   ;;  %s897_s13 = smov 0  }
   0x5   :  { %s899_s14 = smov 0   ;;  %s901_s15 = smov 0  }
   0x6 LB: > { %s916_s16 = sadd.s32 4294967295, %s861_s15   ;;  %s632_s17 = sadd.s32 4294967294, %s861_s15   ;;  %s861_s15 = sphi %s901_s15, %s1194_s15   ;;  %s857_s14 = sphi %s899_s14, %s1193_s14   ;;  %s853_s13 = sphi %s897_s13, %s1192_s13   ;;  %s849_s12 = sphi %s895_s12, %s1191_s12  }
   0x7   : > { %p40_p0 = scmp.ne.s32.totalorder %s853_s13, %s849_s12  ;;  %p1171_p1 = scmp.eq.s32.totalorder %s916_s16, 0 }
   0x8   : > { %p112_p3 = scmp.eq.s32.totalorder %s632_s17, 1  ;;  %p633_p5 = scmp.ge.s32.totalorder %s861_s15, 1 }
   0x9   : > { %p925_p4 = por %p1171_p1, %p40_p0  ;;  %p119_p7 = scmp.lt.s32.totalorder %s861_s15, 3 }
   0xa   : > { %p930_p6 = por %p112_p3, %p40_p0  ;;  %s863_s21 = smov [#allocation6]  }
   0xb   : > { %s1174_s18 = scalar_select %p925_p4, 1, 0 }
   0xc   : > { %s1175_s19 = scalar_select %p930_p6, 1, 0 }
   0xd   : > { %p935_p8 = pnand %p633_p5, %p119_p7  ;;  %s132_s22 = sshll.u32 %s863_s21, 4  ;;  %s133_s22 = int_to_ptr.vmem [resolvable:$true] %s132_s22 }
   0xe   : > { %s943_s23 = sadd.s32 1, %s861_s15   ;;  %s27_s27 = sadd.s32 1, %s857_s14 }
   0xf   : > { %s1176_s20 = scalar_select %p935_p8, 1, 0 }
  0x10   : > { %p672_p10 = pneg %p935_p8  ;;  %s24_s25 = ssub.s32 %s861_s15, %s943_s23 }
  0x11   : > { %p953_p12 = scmp.eq.s32.totalorder %s24_s25, 0  ;;  %s733_s30 = scalar_lea.hbm %s1168_s1, 128 }
  0x12   : > { %p947_p11 = pnand %p672_p10, %p1171_p1  ;;  %p734_p0 = scmp.ne.s32.totalorder %s1168_s1, %s733_s30 }
  0x13   : > { %s1178_s26 = scalar_select %p953_p12, 1, 0 }
  0x14   : > { %p735_p3 = pneg %p947_p11  ;;  %p740_p10 = scmp.lt.u32.totalorder %s733_s30, %s1168_s1 }
  0x16   : > { %p736_p5 = pnand %p735_p3, %p734_p0 }
  0x18   : > { %p737_p7 = pneg %p736_p5 }
  0x1a   : > { %p742_p9 = pnand %p740_p10, %p737_p7 }
  0x1c   : > { %745 = shalt.err (!%p742_p9)
}
  0x1d   : > { %s746_s8 = scalar_lea.vmem %s133_s22, 128  ;;  %p754_p6 = scmp.lt.s32.totalorder %s133_s22, %s133_s22 }
  0x1e   : > { %p747_p1 = scmp.ne.s32.totalorder %s133_s22, %s746_s8  ;;  %p755_p4 = scmp.lt.s32.totalorder %s746_s8, %s746_s8 }
  0x20   : > { %p749_p2 = pnand %p747_p1, %p735_p3  ;;  %p756_p8 = por %p755_p4, %p754_p6 }
  0x22   : > { %p750_p13 = pneg %p749_p2 }
  0x24   : > { %p757_p12 = pnand %p756_p8, %p750_p13 }
  0x26   : > { %760 = shalt.err (!%p757_p12)
}
  0x27   : > { %675 = dma.hbm_to_vmem [thread:$0]  (!%p947_p11), %s1168_s1, 128, %s133_s22, [#allocation7]  }
  0x28   : > { %p1179_p1 = scmp.ne.s32.totalorder %s1178_s26, 0  ;;  %p35_p2 = scmp.eq.s32.totalorder %s861_s15, 0 }
  0x29   : > { %p1180_p4 = scmp.ne.s32.totalorder %s857_s14, %s853_s13  ;;  %p1181_p6 = scmp.eq.s32.totalorder %s916_s16, 1 }
  0x2a   : > { %s979_s11 = scalar_select %p1179_p1, %s857_s14, %s27_s27  }
  0x2b   : > { %p987_p8 = por %p1181_p6, %p1180_p4  ;;  %p685_p9 = scmp.lt.s32.totalorder %s861_s15, 2 }
  0x2c   : > { %s146_s21 = sand.u32 1, %s857_s14   ;;  %p1183_p12 = pmov %p1180_p4 }
  0x2d   : > { %s636_s24 = sshll.u32 %s146_s21, 3  ;;  %s654_s25 = sshll.u32 %s861_s15, 7 }
  0x2e   : > { %p36_p13 = por %p35_p2, %p1183_p12  ;;  %s1000_s22 = scalar_lea.hbm %s1167_s0, %s654_s25 }
  0x2f   : > { %s150_s26 = scalar_lea.vmem [#allocation3], %s636_s24  ;;  %s147_s4 = scalar_lea.sflag [#allocation4], %s146_s21 }
  0x30   : > { %s158_s27 = sshll.u32 %s150_s26, 4  ;;  %p1002_p11 = pnand %p685_p9, %p36_p13  ;;  %s1006_s27 = int_to_ptr.vmem [resolvable:$true] %s158_s27 }
  0x31   : > { %s761_s5 = scalar_lea.hbm %s1000_s22, 128  ;;  %s766_s8 = scalar_lea.hbm %s1167_s0, 256 }
  0x32   : > { %p762_p0 = scmp.ne.s32.totalorder %s1000_s22, %s761_s5  ;;  %p763_p3 = pneg %p1002_p11 }
  0x33   : > { %p767_p10 = scmp.lt.u32.totalorder %s1000_s22, %s1167_s0  ;;  %p768_p1 = scmp.lt.u32.totalorder %s766_s8, %s761_s5 }
  0x34   : > { %p764_p5 = pnand %p763_p3, %p762_p0  ;;  %p770_p4 = scmp.lt.u32.totalorder %s761_s5, %s1000_s22 }
  0x35   : > { %p769_p2 = por %p768_p1, %p767_p10 }
  0x36   : > { %p765_p7 = pneg %p764_p5 }
  0x37   : > { %p771_p6 = por %p770_p4, %p769_p2 }
  0x39   : > { %p772_p9 = pnand %p771_p6, %p765_p7 }
  0x3b   : > { %775 = shalt.err (!%p772_p9)
}
  0x3c   : > { %s776_s21 = scalar_lea.vmem %s1006_s27, 128  ;;  %s864_s24 = smov [#allocation3]  }
  0x3d   : > { %p777_p12 = scmp.ne.s32.totalorder %s1006_s27, %s776_s21  ;;  %s781_s25 = sshll.u32 %s864_s24, 4  ;;  %s782_s25 = int_to_ptr.vmem [resolvable:$false] %s781_s25 }
  0x3e   : > { %s783_s28 = scalar_lea.vmem %s782_s25, 256  ;;  %p784_p5 = scmp.lt.s32.totalorder %s1006_s27, %s782_s25 }
  0x3f   : > { %p779_p13 = pnand %p777_p12, %p763_p3  ;;  %p785_p10 = scmp.lt.s32.totalorder %s783_s28, %s776_s21 }
  0x41   : > { %p780_p0 = pneg %p779_p13  ;;  %p786_p1 = por %p785_p10, %p784_p5 }
  0x43   : > { %p787_p2 = pnand %p786_p1, %p780_p0 }
  0x45   : > { %790 = shalt.err (!%p787_p2)
}
  0x46   : > { %679 = dma.hbm_to_vmem [thread:$0]  (!%p1002_p11), %s1000_s22, 128, %s1006_s27, %s147_s4  }
  0x47   : > { %p1185_p7 = scmp.ne.s32.totalorder %s1176_s20, 0 }
  0x48   : > { %s1036_s29 = sand.u32 (!%p1185_p7), 1, %s853_s13   ;;  %p1186_p3 = scmp.ne.s32.totalorder (!%p1185_p7), %s1174_s18, 0 }
  0x49   : > { %167 = sbr.rel (%p1185_p7) target bundleno = 906 (0x38a), region = 32  ;;  %s640_s26 = sshll.u32 (!%p1185_p7), %s1036_s29, 3 }
  0x4a   : > { %s170_s5 = scalar_lea.sflag (!%p1185_p7), [#allocation4], %s1036_s29  ;;  %s1040_s6 = scalar_lea.vmem (!%p1185_p7), [#allocation3], %s640_s26 }
  0x50   : > { %836 = dma.done.wait (%p1186_p3), %s170_s5, 128  }
  0x51   : > { %838 = vsyncadd (%p1186_p3), %s170_s5, 4294967168  ;;  %p1187_p11 = scmp.eq.s32.totalorder %s916_s16, 0 }
  0x53   : > { %840 = dma.done.wait (%p1187_p11), [#allocation7], 128   ;;  %p1188_p4 = pmov %p1187_p11 }
  0x54   : > { %v213_v0 = vlaneseq  ;;  %v287_v4 = vld [vmem:[%s1169_s2] ss:$2 sm:$0x3]  ;;  %v644_v10 = vld [vmem:[%s1169_s2 + $0x1] ss:$2 sm:$0x3] }
  0x55   : > { %842 = vsyncadd (%p1188_p4), [#allocation7], 4294967168  ;;  %v211_v5 = vld [vmem:[%s1169_s2] ss:$2 sm:$0x3]  ;;  %s865_s25 = smov 127  }
  0x56   : > { %v214_v1 = vshrl.u32 %v213_v0, 7  ;;  %v643_v11 = vld [vmem:[%s1169_s2 + $0x1] ss:$2 sm:$0x3]  ;;  %s866_s28 = smov 111   ;;  %s867_s26 = smov 1  }
  0x57   : > { %v351_v16 = vld [vmem:[%s1169_s2] ss:$2 sm:$0x3]  ;;  %v645_v17 = vld [vmem:[%s1169_s2 + $0x1] ss:$2 sm:$0x3] }
  0x58   : > { %v215_v2 = vsub.s32 0, %v214_v1  ;;  %v219_v3 = vsub.s32 1, %v214_v1  ;;  %s868_s5 = smov 113   ;;  %v1073_v28 = vld [vmem:[%s1040_s6] sm:$0xff]  ;;  %s869_s20 = smov 15   ;;  %v872_v30 = vmov 0.0  }
  0x59   : > { %s870_s22 = smov 17   ;;  %v1079_v29 = vcombine.low %v1073_v28, %v1073_v28  ;;  %s871_s27 = smov 16   ;;  %200 = vst [vmem:[#allocation2] sm:$0xff] %v872_v30  ;;  %201 = vst [vmem:[#allocation2 + $0x8] sm:$0xff] %v872_v30  ;;  %506 = vmatprep.mubr.f32.mxu0 %v872_v30  ;;  %v318_v31 = vcombine.high %v1073_v28, %v1073_v28  ;;  %vm301_vm0 = vcmask 1039360   ;;  %vm225_vm1 = vcmask 908288  }
  0x5a   : > { %v292_v6 = vrot.slane %v287_v4, %v215_v2  ;;  %v296_v7 = vrot.slane %v287_v4, %v219_v3  ;;  %v216_v8 = vrot.slane %v211_v5, %v215_v2  ;;  %v220_v9 = vrot.slane %v211_v5, %v219_v3  ;;  %202 = vst [vmem:[#allocation2 + $0x10] sm:$0xff] %v872_v30  ;;  %s873_s6 = smov 112   ;;  %s642_s30 = sshll.u32 %s1036_s29, 4 }
  0x5b   : > { %v327_v12 = vrot.slane %v644_v10, %v215_v2  ;;  %v331_v13 = vrot.slane %v644_v10, %v219_v3  ;;  %v261_v14 = vrot.slane %v643_v11, %v215_v2  ;;  %v265_v15 = vrot.slane %v643_v11, %v219_v3  ;;  %203 = vst [vmem:[#allocation2 + $0x18] sm:$0xff] %v872_v30  ;;  %s655_s18 = sshll.u32 %s916_s16, 8  ;;  %s199_s4 = scalar_lea.vmem [#allocation8], %s642_s30 }
  0x5c   : > { %v297_v18 = vcombine.low %v292_v6, %v296_v7  ;;  %v221_v19 = vcombine.low %v216_v8, %v220_v9  ;;  %v356_v21 = vrot.slane %v351_v16, %v215_v2  ;;  %v360_v22 = vrot.slane %v351_v16, %v219_v3  ;;  %204 = vst [vmem:[#allocation2 + $0x20] sm:$0xff] %v872_v30  ;;  %s552_s7 = sshll.u32 %s199_s4, 4  ;;  %s1123_s10 = scalar_lea.hbm %s1170_s3, %s655_s18  ;;  %s1125_s7 = int_to_ptr.vmem [resolvable:$true] %s552_s7 }
  0x5d   : > { %v332_v20 = vcombine.low %v327_v12, %v331_v13  ;;  %v266_v23 = vcombine.low %v261_v14, %v265_v15  ;;  %v396_v24 = vrot.slane %v645_v17, %v215_v2  ;;  %v400_v25 = vrot.slane %v645_v17, %v219_v3  ;;  %205 = vst [vmem:[#allocation2 + $0x28] sm:$0xff] %v872_v30  ;;  %s538_s16 = scalar_lea.sflag [#allocation5], %s1036_s29  ;;  %s791_s21 = scalar_lea.vmem %s1125_s7, 256 }
  0x5e   : > { %298 = vrot.lane.b32.xlu1 %v297_v18, %s865_s25  ;;  %222 = vrot.lane.b32.xlu0 %v221_v19, %s866_s28  ;;  %v361_v26 = vcombine.low %v356_v21, %v360_v22  ;;  %206 = vst [vmem:[#allocation2 + $0x30] sm:$0xff] %v872_v30  ;;  %207 = vst [vmem:[#allocation2 + $0x38] sm:$0xff] %v872_v30  ;;  %vm311_vm2 = vcmask 7168   ;;  %vm270_vm3 = vcmask 924672   ;;  %vm280_vm4 = vcmask 121856   ;;  %p792_p6 = scmp.ne.s32.totalorder %s1125_s7, %s791_s21  ;;  %s874_s24 = smov [#allocation8]  }
  0x5f   : > { %v401_v27 = vcombine.low %v396_v24, %v400_v25  ;;  %208 = vst [vmem:[#allocation2 + $0x40] sm:$0xf] %v872_v30  ;;  %209 = vst [vmem:[#allocation2 + $0x48] sm:$0xf] %v872_v30  ;;  %vm248_vm5 = vcmask 130048   ;;  %vm252_vm6 = vcmask 1047684  }
  0x60   : > { %320 = vst [vmem:[#allocation2 + $0x20] sm:$0xf] %v1073_v28  ;;  %321 = vst [vmem:[#allocation2 + $0x28] sm:$0xf] %v318_v31  ;;  %vm235_vm7 = vcmask 138240   ;;  %vm239_vm8 = vcmask 1043592   ;;  %p793_p9 = pnand %p792_p6, %p987_p8 }
  0x61   : > { %vm349_vm9 = vcmask 1039364   ;;  %vm284_vm10 = vcmask 1043584   ;;  %vm315_vm11 = vcmask 1047564   ;;  %vm378_vm12 = vcmask 912384  }
  0x62   : > { %333 = vrot.lane.b32.xlu1 %v332_v20, %s867_s26  ;;  %267 = vrot.lane.b32.xlu0 %v266_v23, %s868_s5  ;;  %vm384_vm13 = vcmask 916480   ;;  %vm389_vm14 = vcmask 916484   ;;  %vm418_vm15 = vcmask 904192   ;;  %p794_p12 = pneg %p793_p9 }
  0x66   : > { %362 = vrot.lane.b32.xlu0 %v361_v26, %s869_s20  ;;  %402 = vrot.lane.b32.xlu1 %v401_v27, %s870_s22 }
  0x6a   : > { %246 = vrot.lane.b32.xlu1 %v1073_v28, %s871_s27  ;;  %244 = vrot.lane.b32.xlu0 %v1079_v29, %s871_s27 }
  0xd0   : > { %v299_v32 = vpop.permute.xlu1 %298  ;;  %v223_v33 = vpop.permute.xlu0 %222 }
  0xd1   : > { %v300_v34 = vrot.slane %v299_v32, 4  ;;  %v224_v35 = vrot.slane %v223_v33, 4 }
  0xd3   : > { %v302_v36 = vsel %vm301_vm0, %v299_v32, %v300_v34  ;;  %v226_v37 = vsel %vm225_vm1, %v223_v33, %v224_v35  ;;  %v420_v35 = vld [vmem:[#allocation6] sm:$0xff] }
  0xd4   : > { %v304_v38 = vmul.f32 %v302_v36, %v1073_v28  ;;  %v228_v39 = vmul.f32 %v226_v37, %v1073_v28  ;;  %v334_v40 = vpop.permute.xlu1 %333  ;;  %v268_v41 = vpop.permute.xlu0 %267 }
  0xd5   : > { %v335_v42 = vrot.slane %v334_v40, 4  ;;  %v269_v43 = vrot.slane %v268_v41, 4 }
  0xd6   : > { %309 = vrot.lane.b32.xlu1 %v304_v38, %s867_s26  ;;  %231 = vrot.lane.b32.xlu0 %v228_v39, %s870_s22  ;;  %v230_v53 = vcombine.high %v228_v39, %v228_v39  ;;  %v306_v58 = vcombine.low %v304_v38, %v304_v38 }
  0xd7   : > { %v336_v44 = vsel %vm311_vm2, %v335_v42, %v334_v40  ;;  %v271_v45 = vsel %vm270_vm3, %v268_v41, %v269_v43 }
  0xd8   : > { %v338_v46 = vmul.f32 %v336_v44, %v1073_v28  ;;  %v273_v47 = vmul.f32 %v271_v45, %v1073_v28  ;;  %v363_v48 = vpop.permute.xlu0 %362  ;;  %v403_v49 = vpop.permute.xlu1 %402 }
  0xd9   : > { %v364_v50 = vrot.slane %v363_v48, 4  ;;  %v404_v57 = vrot.slane %v403_v49, 4 }
  0xda   : > { %343 = vrot.lane.b32.xlu1 %v338_v46, %s865_s25  ;;  %276 = vrot.lane.b32.xlu0 %v273_v47, %s869_s20  ;;  %v275_v59 = vcombine.high %v273_v47, %v273_v47  ;;  %v340_v61 = vcombine.low %v338_v46, %v338_v46 }
  0xdb   : > { %v365_v51 = vsel %vm280_vm4, %v364_v50, %v363_v48  ;;  %v405_v60 = vsel %vm235_vm7, %v404_v57, %v403_v49 }
  0xdc   : > { %v367_v52 = vmul.f32 %v365_v51, %v1073_v28  ;;  %v247_v54 = vpop.permute.xlu1 %246  ;;  %v245_v55 = vpop.permute.xlu0 %244  ;;  %v407_v63 = vmul.f32 %v405_v60, %v1073_v28 }
  0xdd   : > { %v249_v56 = vsel %vm248_vm5, %v245_v55, %v247_v54  ;;  %253 = vst.msk [vmem:[#allocation2] sm:$0xf0] %vm252_vm6, %v245_v55 }
  0xde   : > { %370 = vrot.lane.b32.xlu0 %v367_v52, %s868_s5  ;;  %233 = vrot.lane.b32.xlu1 %v230_v53, %s870_s22  ;;  %254 = vst [vmem:[#allocation2 + $0x8] sm:$0xf0] %v249_v56  ;;  %v369_v62 = vcombine.high %v367_v52, %v367_v52  ;;  %v409_v0 = vcombine.high %v407_v63, %v407_v63 }
  0xe2   : > { %307 = vrot.lane.b32.xlu0 %v306_v58, %s867_s26  ;;  %278 = vrot.lane.b32.xlu1 %v275_v59, %s869_s20 }
  0xe6   : > { %341 = vrot.lane.b32.xlu0 %v340_v61, %s865_s25  ;;  %372 = vrot.lane.b32.xlu1 %v369_v62, %s868_s5  ;;  %s795_s25 = sshll.u32 %s874_s24, 4  ;;  %s796_s25 = int_to_ptr.vmem [resolvable:$false] %s795_s25 }
  0xe7   : > { %p798_p13 = scmp.lt.s32.totalorder %s1125_s7, %s796_s25 }
  0xea   : > { %380 = vrot.lane.b32.xlu0 %v1079_v29, %s873_s6  ;;  %382 = vrot.lane.b32.xlu1 %v1073_v28, %s873_s6 }
  0xee   : > { %410 = vrot.lane.b32.xlu0 %v407_v63, %s866_s28  ;;  %412 = vrot.lane.b32.xlu1 %v409_v0, %s866_s28  ;;  %s797_s28 = scalar_lea.vmem %s796_s25, 512 }
  0xef   : > { %p799_p0 = scmp.lt.s32.totalorder %s797_s28, %s791_s21 }
  0xf1   : > { %p800_p5 = por %p799_p0, %p798_p13 }
  0xf3   : > { %p801_p10 = pnand %p800_p5, %p794_p12 }
 0x148   : > { %v310_v1 = vpop.permute.xlu1 %309  ;;  %v232_v2 = vpop.permute.xlu0 %231 }
 0x149   : > { %240 = vst.msk [vmem:[#allocation2] sm:$0xf] %vm239_vm8, %v232_v2 }
 0x14c   : > { %v344_v3 = vpop.permute.xlu1 %343  ;;  %v277_v4 = vpop.permute.xlu0 %276 }
 0x14d   : > { %350 = vst.msk [vmem:[#allocation2 + $0x28] sm:$0xf0] %vm349_vm9, %v344_v3 }
 0x14e   : > { %285 = vst.msk [vmem:[#allocation2 + $0x10] sm:$0xf] %vm284_vm10, %v277_v4 }
 0x150   : > { %v371_v5 = vpop.permute.xlu0 %370  ;;  %v234_v6 = vpop.permute.xlu1 %233  ;;  %v421_v23 = vld [vmem:[#allocation2] sm:$0xff] }
 0x151   : > { %v236_v7 = vsel %vm235_vm7, %v232_v2, %v234_v6 }
 0x152   : > { %241 = vst [vmem:[#allocation2 + $0x8] sm:$0xf] %v236_v7 }
 0x154   : > { %v308_v8 = vpop.permute.xlu0 %307  ;;  %v279_v9 = vpop.permute.xlu1 %278  ;;  %v426_v28 = vld [vmem:[#allocation2 + $0x28] sm:$0xff] }
 0x155   : > { %v312_v10 = vsel %vm311_vm2, %v308_v8, %v310_v1  ;;  %316 = vst.msk [vmem:[#allocation2 + $0x10] sm:$0xf0] %vm315_vm11, %v308_v8  ;;  %v281_v11 = vsel %vm280_vm4, %v277_v4, %v279_v9  ;;  %vm431_vm2 = vcmask 293888  }
 0x156   : > { %317 = vst [vmem:[#allocation2 + $0x18] sm:$0xf0] %v312_v10  ;;  %286 = vst [vmem:[#allocation2 + $0x18] sm:$0xf] %v281_v11 }
 0x158   : > { %v342_v12 = vpop.permute.xlu0 %341  ;;  %v373_v13 = vpop.permute.xlu1 %372 }
 0x159   : > { %v345_v14 = vsel %vm301_vm0, %v342_v12, %v344_v3  ;;  %v374_v15 = vsel %vm270_vm3, %v371_v5, %v373_v13  ;;  %379 = vst.msk [vmem:[#allocation2 + $0x38] sm:$0xf] %vm378_vm12, %v373_v13  ;;  %v422_v20 = vld [vmem:[#allocation2 + $0x8] sm:$0xff]  ;;  %vm435_vm0 = vcmask 1043456  }
 0x15a   : > { %348 = vst [vmem:[#allocation2 + $0x20] sm:$0xf0] %v345_v14  ;;  %377 = vst [vmem:[#allocation2 + $0x30] sm:$0xf] %v374_v15 }
 0x15c   : > { %v381_v16 = vpop.permute.xlu0 %380  ;;  %v383_v17 = vpop.permute.xlu1 %382  ;;  %v423_v18 = vld [vmem:[#allocation2 + $0x10] sm:$0xff] }
 0x15d   : > { %v385_v19 = vsel %vm384_vm13, %v381_v16, %v383_v17  ;;  %390 = vst.msk [vmem:[#allocation2 + $0x38] sm:$0xf0] %vm389_vm14, %v383_v17  ;;  %v424_v21 = vld [vmem:[#allocation2 + $0x18] sm:$0xff]  ;;  %v658_v24 = vpack.c.bf16 %v423_v18, %v421_v23 }
 0x15e   : > { %388 = vst [vmem:[#allocation2 + $0x30] sm:$0xf0] %v385_v19  ;;  %v656_v22 = vpack.c.bf16 %v424_v21, %v422_v20 }
 0x160   : > { %v411_v25 = vpop.permute.xlu0 %410  ;;  %v413_v26 = vpop.permute.xlu1 %412  ;;  %657 = vmatprep.subr.bf16.mxu0 %v656_v22 }
 0x161   : > { %v414_v27 = vsel %vm225_vm1, %v411_v25, %v413_v26  ;;  %419 = vst.msk [vmem:[#allocation2 + $0x48] sm:$0xf] %vm418_vm15, %v413_v26  ;;  %659 = vmatpush1.bf16.msra.mxu0 %v658_v24  ;;  %v425_v31 = vld [vmem:[#allocation2 + $0x20] sm:$0xff] }
 0x162   : > { %417 = vst [vmem:[#allocation2 + $0x40] sm:$0xf] %v414_v27 }
 0x164   : > { %v428_v29 = vld [vmem:[#allocation2 + $0x38] sm:$0xff] }
 0x165   : > { %v660_v30 = vpack.c.bf16 %v428_v29, %v426_v28  ;;  %v427_v32 = vld [vmem:[#allocation2 + $0x30] sm:$0xff] }
 0x166   : > { %v662_v33 = vpack.c.bf16 %v427_v32, %v425_v31 }
 0x167   : > { %661 = vmatprep.subr.bf16.mxu0 %v660_v30 }
 0x168   : > { %663 = vmatpush1.bf16.msra.mxu0 %v662_v33  ;;  %v430_v34 = vld [vmem:[#allocation2 + $0x48] sm:$0xf] }
 0x169   : > { %646 = vmatprep.subr.msk.mxu0 %vm435_vm0, %v430_v34  ;;  %v429_v36 = vld [vmem:[#allocation2 + $0x40] sm:$0xf] }
 0x16c   : > { %647 = vmatpush1.msk.msra.mxu0 %vm435_vm0, %v429_v36 }
 0x16d   : > { %648 = vmatmul.mubr.msk.f32.vlgmr.msra.gmra.mrb[0].mxu0 %vm431_vm2, %v420_v35 }
 0x240   : > { %v508_v37 = vpop.f32.mrb[0].mxu0 }
 0x241   : > { %v510_v38 = vpop.f32.mrb[1].mxu0 }
 0x242   : > { %v513_v39 = vadd.f32 %v510_v38, %v508_v37 }
 0x244   : > { %514 = vadd.xlane.f32.xlu0 %v513_v39 }
 0x2d1   : > { %v515_v40 = vpop.xlane.xlu0 %514 }
 0x2d2   : > { %v516_v41 = vmul.f32 0.00390625, %v515_v40 }
 0x2d4   : > { %v517_v42 = vsub.f32 %v508_v37, %v516_v41  ;;  %v518_v43 = vsub.f32 %v510_v38, %v516_v41 }
 0x2d6   : > { %v519_v44 = vmul.f32 %v517_v42, %v517_v42  ;;  %v520_v45 = vmul.f32 %v518_v43, %v518_v43 }
 0x2d8   : > { %v521_v46 = vadd.f32 %v520_v45, %v519_v44 }
 0x2da   : > { %522 = vadd.xlane.f32.xlu1 %v521_v46 }
 0x367   : > { %v523_v47 = vpop.xlane.xlu1 %522 }
 0x368   : > { %v524_v48 = vmul.f32 0.00390625, %v523_v47 }
 0x36a   : > { %v525_v49 = vadd.f32 1e-05, %v524_v48 }
 0x36c   : > { %731 = vrsqrt.f32 %v525_v49 }
 0x376   : > { %v732_v50 = vpop.eup %731 }
 0x377   : > { %v527_v51 = vmul.f32 %v732_v50, %v517_v42  ;;  %v528_v52 = vmul.f32 %v732_v50, %v518_v43 }
 0x379   : > { %vm529_vm1 = vcmp.ge.f32.partialorder %v527_v51, 0.0  ;;  %vm530_vm3 = vcmp.ge.f32.partialorder %v528_v52, 0.0  ;;  %v531_v53 = vmul.f32 0.2, %v527_v51  ;;  %v532_v54 = vmul.f32 0.2, %v528_v52 }
 0x37b   : > { %v533_v55 = vsel %vm529_vm1, %v527_v51, %v531_v53  ;;  %v534_v56 = vsel %vm530_vm3, %v528_v52, %v532_v54 }
 0x37c   : > { %535 = vst [vmem:[%s199_s4] sm:$0xff] %v533_v55  ;;  %536 = vst [vmem:[%s199_s4 + $0x8] sm:$0xff] %v534_v56 }
 0x37d   : > { %804 = shalt.err (!%p801_p10)
}
 0x37e   : > { %s805_s29 = scalar_lea.hbm %s1123_s10, 256  ;;  %s809_s20 = scalar_lea.hbm %s1170_s3, 512 }
 0x37f   : > { %p806_p1 = scmp.ne.s32.totalorder %s1123_s10, %s805_s29  ;;  %p810_p3 = scmp.lt.u32.totalorder %s1123_s10, %s1170_s3 }
 0x380   : > { %p811_p11 = scmp.lt.u32.totalorder %s809_s20, %s805_s29  ;;  %p813_p6 = scmp.lt.u32.totalorder %s805_s29, %s1123_s10 }
 0x381   : > { %p807_p2 = pnand %p806_p1, %p987_p8 }
 0x382   : > { %p812_p4 = por %p811_p11, %p810_p3 }
 0x383   : > { %p808_p7 = pneg %p807_p2 }
 0x384   : > { %p814_p9 = por %p813_p6, %p812_p4 }
 0x386   : > { %p815_p12 = pnand %p814_p9, %p808_p7 }
 0x388   : > { %818 = shalt.err (!%p815_p12)
}
 0x389   : > { %670 = dma.vmem_to_hbm [thread:$0]  (%p987_p8), %s1125_s7, 256, %s1123_s10, %s538_s16  }
 0x38a PF: > { %s564_s6 = sand.u32 1, %s849_s12   ;;  %p1189_p13 = scmp.ne.s32.totalorder %s1175_s19, 0 }
 0x38b   : > { %p1190_p0 = scmp.ge.s32.totalorder %s861_s15, 2  ;;  %s565_s30 = scalar_lea.sflag [#allocation5], %s564_s6 }
 0x38d   : > { %p681_p5 = pnand %p1190_p0, %p1189_p13 }
 0x38f   : > { %844 = dma.done.wait (!%p681_p5), %s565_s30, 256  }
 0x390   : > { %846 = vsyncadd (!%p681_p5), %s565_s30, 4294967040  ;;  %p17_p10 = scmp.ge.s32.totalorder %s943_s23, 4   ;;  %s1191_s12 = smov %s853_s13 }
 0x391   : > { %s1192_s13 = smov %s857_s14  ;;  %s1193_s14 = smov %s979_s11 }
 0x392   : > { %s1194_s15 = smov %s943_s23  ;;  %19 = sbr.rel (!%p17_p10) target bundleno = 6 (0x6), region = 82 }
 0x399   :  { %570 = vsyncpa [#allocation4], 1 }
 0x39a   :  { %572 = vsyncpa [#allocation4 + $0x1], 1 }
 0x39b   :  { %573 = vsyncpa [#allocation7], 1 }
 0x39c   :  { %574 = vsyncpa [#allocation5], 1 }
 0x39d   :  { %576 = vsyncpa [#allocation5 + $0x1], 1 }

</bundles_post_ra>
